<compile_context>
chip_gen: v5e
topology: v5e:2x2
jax: 0.10.0
libtpu: 0.0.40
codegen_flags: <defaults>
</compile_context>

<pallas_src>
import functools

import jax
import jax.numpy as jnp
from jax.experimental import pallas as pl
from jax.experimental.pallas import tpu as pltpu


def _round_up(x, m):
    return (x + m - 1) // m * m


# ---------------------------------------------------------------------------
# Hardware / VMEM budgeting helpers (trace-time Python, never in the kernel).
# ---------------------------------------------------------------------------
def _tpu_budget():
    """Returns (per-core VMEM capacity bytes, multi_tensorcore_per_chip)."""
    vmem_cap = 128 << 20
    multi_core = False
    try:
        vmem_cap = int(pltpu.get_tpu_info().vmem_capacity_bytes)
    except Exception:
        pass
    try:
        kind = jax.devices()[0].device_kind.lower()
        multi_core = "v7" in kind
    except Exception:
        pass
    # v7x is the 64 MiB-per-TC generation and has 2 TCs per chip.
    if vmem_cap <= (96 << 20):
        multi_core = True
    return vmem_cap, multi_core


def _tile_vmem_bytes(tm, ti, H, elt, out_elt):
    """Double-buffered x / wgu / wd / out tiles + f32 accumulator."""
    buffers = 2 * (
        tm * H * elt          # x tile (compute dtype)
        + 2 * H * ti * elt    # fused gate|up weight tile
        + ti * H * elt        # down-proj weight tile
        + tm * H * out_elt    # output tile at its real dtype width
    )
    return buffers + tm * H * 4  # f32 accumulator scratch (single-buffered)


# ---------------------------------------------------------------------------
# Kernel
# ---------------------------------------------------------------------------
def _packed_mlp_kernel(x_ref, wgu_ref, wd_ref, o_ref, acc_ref):
    """One (token-tile, intermediate-tile) step of the fused gated MLP.

    x_ref   : [tm, H]
    wgu_ref : [H, 2*ti]   (columns [0:ti] = gate weights, [ti:2*ti] = up)
    wd_ref  : [ti, H]
    o_ref   : [tm, H]
    acc_ref : [tm, H] f32 scratch (partial down-proj sums over the I axis)
    """
    k = pl.program_id(1)

    @pl.when(k == 0)
    def _():
        acc_ref[...] = jnp.zeros_like(acc_ref)

    ti = wgu_ref.shape[1] // 2  # static, lane-aligned (multiple of 128)

    # Single MXU pass produces gate and up projections for this I-tile.
    gu = jnp.dot(x_ref[...], wgu_ref[...], preferred_element_type=jnp.float32)
    g = gu[:, :ti]
    u = gu[:, ti:]

    # SiLU(g) * u -- elementwise over I, so per-I-tile partials are exact.
    h = (g * jax.nn.sigmoid(g)) * u

    # Partial down-projection, accumulated across I-tiles in f32.
    acc_ref[...] += jnp.dot(
        h.astype(wd_ref.dtype), wd_ref[...], preferred_element_type=jnp.float32
    )

    @pl.when(k == pl.num_programs(1) - 1)
    def _():
        o_ref[...] = acc_ref[...].astype(o_ref.dtype)


# ---------------------------------------------------------------------------
# One-time weight preparation (do NOT run per forward call).
# ---------------------------------------------------------------------------
def pack_packed_mlp_weights(wg, wu, wd, *, ti=512, compute_dtype=jnp.bfloat16):
    """Cast weights to the MXU compute dtype, pad I to a tile multiple, and
    block-interleave gate/up per I-tile as wgu[H, n_k*2*ti].

    Returns (wgu, wd_padded, ti_eff).
    """
    H, I = wg.shape
    assert wu.shape == (H, I) and wd.shape == (I, H)

    ti_eff = min(max(128, (ti // 128) * 128), _round_up(I, 128))
    I_pad = _round_up(I, ti_eff)

    # TODO(synk): openquant/fp8.py quantizes weights to fp8; on v7x the MXU
    # consumes fp8 natively (fold per-channel scales into the f32 accum), but
    # without scales/checkpoint here we keep bf16 operands.
    wg_c = wg.astype(compute_dtype)
    wu_c = wu.astype(compute_dtype)
    wd_c = wd.astype(compute_dtype)
    if I_pad != I:
        wg_c = jnp.pad(wg_c, ((0, 0), (0, I_pad - I)))
        wu_c = jnp.pad(wu_c, ((0, 0), (0, I_pad - I)))
        wd_c = jnp.pad(wd_c, ((0, I_pad - I), (0, 0)))

    n_k = I_pad // ti_eff
    # Per k-tile layout: [wg_k (ti cols) | wu_k (ti cols)].
    wgu = jnp.concatenate(
        [wg_c.reshape(H, n_k, 1, ti_eff), wu_c.reshape(H, n_k, 1, ti_eff)],
        axis=2,
    ).reshape(H, n_k * 2 * ti_eff)
    return wgu, wd_c, ti_eff


# ---------------------------------------------------------------------------
# Forward
# ---------------------------------------------------------------------------
@functools.partial(jax.jit, static_argnames=("tm", "ti"))
def _forward_impl(x, wgu, wd_p, *, tm, ti):
    T, H = x.shape
    I_pad = wd_p.shape[0]
    n_k = I_pad // ti
    out_dtype = x.dtype
    compute_dtype = wgu.dtype
    elt = jnp.dtype(compute_dtype).itemsize
    out_elt = jnp.dtype(out_dtype).itemsize

    # Per-call activation prep only (weights are pre-packed offline).
    T_pad = _round_up(T, tm)
    xc = x.astype(compute_dtype)
    if T_pad != T:
        xc = jnp.pad(xc, ((0, T_pad - T), (0, 0)))
    n_tok = T_pad // tm
    grid = (n_tok, n_k)

    cost = pl.CostEstimate(
        flops=6 * T_pad * H * I_pad,                      # gate + up + down matmuls
        transcendentals=2 * T_pad * I_pad,                # sigmoid ~ exp + recip
        bytes_accessed=T_pad * H * (elt + out_elt)        # x read + y write
        + n_tok * 3 * H * I_pad * elt,                    # weights re-streamed / tok tile
    )

    vmem_cap, _ = _tpu_budget()
    cap_budget = max(24 << 20, min(100 << 20, vmem_cap - (8 << 20)))
    tile_bytes = _tile_vmem_bytes(tm, ti, H, elt, out_elt)
    vmem_limit = int(min(max(tile_bytes * 5 // 4 + (4 << 20), 24 << 20), cap_budget))

    out = pl.pallas_call(
        _packed_mlp_kernel,
        out_shape=jax.ShapeDtypeStruct((T_pad, H), out_dtype),
        grid_spec=pltpu.PrefetchScalarGridSpec(
            num_scalar_prefetch=0,
            grid=grid,
            in_specs=[
                pl.BlockSpec((tm, H), lambda i, k: (i, 0)),        # x   : token tile
                pl.BlockSpec((H, 2 * ti), lambda i, k: (0, k)),    # wgu : fused g|u I-tile
                pl.BlockSpec((ti, H), lambda i, k: (k, 0)),        # wd  : I-tile
            ],
            out_specs=pl.BlockSpec((tm, H), lambda i, k: (i, 0)),
            scratch_shapes=[pltpu.VMEM((tm, H), jnp.float32)],
        ),
        compiler_params=pltpu.CompilerParams(
            dimension_semantics=("parallel", "arbitrary"),
            vmem_limit_bytes=vmem_limit,
        ),
        cost_estimate=cost,
    )(xc, wgu, wd_p)

    return out[:T] if T_pad != T else out


def packed_mlp_forward(x, wgu, wd_p, ti, *, tm=None):
    """x: [T, H]; wgu: [H, n_k*2*ti] (from pack_packed_mlp_weights);
    wd_p: [I_pad, H].  Returns [T, H] in x.dtype."""
    T, H = x.shape
    elt = jnp.dtype(wgu.dtype).itemsize
    out_elt = jnp.dtype(x.dtype).itemsize

    vmem_cap, multi_core = _tpu_budget()
    cap_budget = max(24 << 20, min(100 << 20, vmem_cap - (8 << 20)))

    # Per-generation token tile: the weight tiles are re-streamed once per
    # token tile, so tm is the main HBM-roofline lever.
    if tm is None:
        tm = 512 if vmem_cap <= (96 << 20) else 1024
    tm_eff = max(8, min((tm // 8) * 8, _round_up(T, 8)))

    # Shrink tm until the double-buffered working set fits the real budget.
    while (
        _tile_vmem_bytes(tm_eff, ti, H, elt, out_elt) * 5 // 4 + (4 << 20) > cap_budget
        and tm_eff > 64
    ):
        tm_eff = max(64, (tm_eff // 2 // 8) * 8)

    # v7x: guarantee >=2 token tiles so both TensorCores get work.
    if multi_core and _round_up(T, tm_eff) // tm_eff < 2 and T >= 16:
        tm_eff = max(8, _round_up((T + 1) // 2, 8))

    return _forward_impl(x, wgu, wd_p, tm=tm_eff, ti=ti)


def packed_mlp(x, wg, wu, wd, *, ti=512, tm=None, compute_dtype=jnp.bfloat16):
    """Convenience one-shot API: packs weights, then runs the fused forward.
    For repeated calls, call pack_packed_mlp_weights once and reuse."""
    wgu, wd_p, ti_eff = pack_packed_mlp_weights(
        wg, wu, wd, ti=ti, compute_dtype=compute_dtype
    )
    return packed_mlp_forward(x, wgu, wd_p, ti_eff, tm=tm)


# ---------------------------------------------------------------------------
# Reference
# ---------------------------------------------------------------------------
def _reference_mlp(x, wg, wu, wd, compute_dtype=jnp.bfloat16):
    """Pure-JAX reference matching the kernel's bf16-operand / f32-accum math."""
    xf = x.astype(compute_dtype).astype(jnp.float32)
    wgf = wg.astype(compute_dtype).astype(jnp.float32)
    wuf = wu.astype(compute_dtype).astype(jnp.float32)
    wdf = wd.astype(compute_dtype).astype(jnp.float32)
    g = xf @ wgf
    u = xf @ wuf
    h = (g * jax.nn.sigmoid(g)) * u
    h = h.astype(compute_dtype).astype(jnp.float32)
    return (h @ wdf).astype(x.dtype)


if __name__ == "__main__":
    # Small, forward-consistent shapes: batch=2, seq=8 -> T=16 tokens,
    # hidden=32, intermediate=64.  (Adaptive tiling shrinks tm/ti to fit.)
    batch, seq, hidden, inter = 2, 8, 32, 64
    T = batch * seq

    key = jax.random.PRNGKey(0)
    kx, kg, ku, kd = jax.random.split(key, 4)

    x = jax.random.normal(kx, (batch, seq, hidden), dtype=jnp.float32)
    wg = jax.random.normal(kg, (hidden, inter), dtype=jnp.float32) * 0.05
    wu = jax.random.normal(ku, (hidden, inter), dtype=jnp.float32) * 0.05
    wd = jax.random.normal(kd, (inter, hidden), dtype=jnp.float32) * 0.05

    x_tok = x.reshape(T, hidden)                       # [B, S, H] -> [T, H]

    # One-time weight packing (cast + pad + gate/up interleave) ...
    wgu, wd_p, ti_eff = pack_packed_mlp_weights(wg, wu, wd)
    # ... then the per-call forward only touches the activations.
    out = packed_mlp_forward(x_tok, wgu, wd_p, ti_eff)
    out = jax.block_until_ready(out)
    out = out.reshape(batch, seq, hidden)

    ref = _reference_mlp(x_tok, wg, wu, wd).reshape(batch, seq, hidden)
    assert out.shape == (batch, seq, hidden)
    assert jnp.allclose(out, ref, atol=1e-2, rtol=1e-2), "mismatch vs reference"

    print("KERNEL_OK")
</pallas_src>

<mosaic_0001>
module attributes {stable_mosaic.version = 11 : i64} {
  func.func @_packed_mlp_kernel(%arg0: i32, %arg1: i32, %arg2: memref<16x32xbf16, #tpu.memory_space<vmem>>, %arg3: memref<32x256xbf16, #tpu.memory_space<vmem>>, %arg4: memref<128x32xbf16, #tpu.memory_space<vmem>>, %arg5: memref<16x32xf32, #tpu.memory_space<vmem>>, %arg6: memref<16x32xf32, #tpu.memory_space<vmem>>) attributes {dimension_semantics = [#tpu.dimension_semantics<parallel>, #tpu.dimension_semantics<arbitrary>], iteration_bounds = array<i64: 1, 1>, scalar_prefetch = 0 : i64, scratch_operands = 1 : i64, tpu.core_type = #tpu.core_type<tc>, window_params = [{transform_indices = @transform_0, window_bounds = array<i64: 16, 32>}, {transform_indices = @transform_1, window_bounds = array<i64: 32, 256>}, {transform_indices = @transform_2, window_bounds = array<i64: 128, 32>}, {transform_indices = @transform_3, window_bounds = array<i64: 16, 32>}]} {
    %c0_i32 = arith.constant 0 : i32
    %0 = arith.cmpi eq, %arg1, %c0_i32 : i32
    %1 = arith.extui %0 : i1 to i32
    %c0_i32_0 = arith.constant 0 : i32
    %2 = arith.cmpi ne, %1, %c0_i32_0 : i32
    scf.if %2 {
      %cst_14 = arith.constant 0.000000e+00 : f32
      %24 = vector.broadcast %cst_14 : f32 to vector<16x32xf32>
      %c0_15 = arith.constant 0 : index
      %c0_16 = arith.constant 0 : index
      %25 = vector.load %arg6[%c0_15, %c0_16] : memref<16x32xf32, #tpu.memory_space<vmem>>, vector<16x32xf32>
      tpu.vector_store %arg6[%c0_15, %c0_16], %24 {strides = array<i32>} : memref<16x32xf32, #tpu.memory_space<vmem>>, vector<16x32xf32>,
    } else {
    }
    %c0 = arith.constant 0 : index
    %c0_1 = arith.constant 0 : index
    %3 = vector.load %arg2[%c0, %c0_1] : memref<16x32xbf16, #tpu.memory_space<vmem>>, vector<16x32xbf16>
    %c0_2 = arith.constant 0 : index
    %c0_3 = arith.constant 0 : index
    %4 = vector.load %arg3[%c0_2, %c0_3] : memref<32x256xbf16, #tpu.memory_space<vmem>>, vector<32x256xbf16>
    %cst = arith.constant dense<0.000000e+00> : vector<16x256xf32>
    %5 = tpu.matmul %3, %4, %cst {dimension_numbers = #tpu.dot_dimension_numbers<[1], [0], [0], [1], [0, 0, 1, 1], [], []>} : vector<16x32xbf16>, vector<32x256xbf16>, vector<16x256xf32> -> vector<16x256xf32>
    %6 = vector.extract_strided_slice %5 {offsets = [0, 0], sizes = [16, 128], strides = [1, 1]} : vector<16x256xf32> to vector<16x128xf32>
    %7 = vector.extract_strided_slice %5 {offsets = [0, 128], sizes = [16, 128], strides = [1, 1]} : vector<16x256xf32> to vector<16x128xf32>
    %8 = arith.negf %6 : vector<16x128xf32>
    %9 = math.exp %8 : vector<16x128xf32>
    %cst_4 = arith.constant 1.000000e+00 : f32
    %10 = vector.broadcast %cst_4 : f32 to vector<16x128xf32>
    %11 = arith.addf %10, %9 : vector<16x128xf32>
    %12 = arith.divf %10, %11 : vector<16x128xf32>
    %13 = arith.mulf %6, %12 : vector<16x128xf32>
    %14 = arith.mulf %13, %7 : vector<16x128xf32>
    %c0_5 = arith.constant 0 : index
    %c0_6 = arith.constant 0 : index
    %15 = vector.load %arg6[%c0_5, %c0_6] : memref<16x32xf32, #tpu.memory_space<vmem>>, vector<16x32xf32>
    %16 = arith.truncf %14 : vector<16x128xf32> to vector<16x128xbf16>
    %c0_7 = arith.constant 0 : index
    %c0_8 = arith.constant 0 : index
    %17 = vector.load %arg4[%c0_7, %c0_8] : memref<128x32xbf16, #tpu.memory_space<vmem>>, vector<128x32xbf16>
    %cst_9 = arith.constant dense<0.000000e+00> : vector<16x32xf32>
    %18 = tpu.matmul %16, %17, %cst_9 {dimension_numbers = #tpu.dot_dimension_numbers<[1], [0], [0], [1], [0, 0, 1, 1], [], []>} : vector<16x128xbf16>, vector<128x32xbf16>, vector<16x32xf32> -> vector<16x32xf32>
    %19 = arith.addf %15, %18 : vector<16x32xf32>
    %c0_10 = arith.constant 0 : index
    %c0_11 = arith.constant 0 : index
    %20 = vector.load %arg6[%c0_10, %c0_11] : memref<16x32xf32, #tpu.memory_space<vmem>>, vector<16x32xf32>
    tpu.vector_store %arg6[%c0_10, %c0_11], %19 {strides = array<i32>} : memref<16x32xf32, #tpu.memory_space<vmem>>, vector<16x32xf32>,
    %c0_i32_12 = arith.constant 0 : i32
    %21 = arith.cmpi eq, %arg1, %c0_i32_12 : i32
    %22 = arith.extui %21 : i1 to i32
    %c0_i32_13 = arith.constant 0 : i32
    %23 = arith.cmpi ne, %22, %c0_i32_13 : i32
    scf.if %23 {
      %c0_14 = arith.constant 0 : index
      %c0_15 = arith.constant 0 : index
      %24 = vector.load %arg6[%c0_14, %c0_15] : memref<16x32xf32, #tpu.memory_space<vmem>>, vector<16x32xf32>
      %c0_16 = arith.constant 0 : index
      %c0_17 = arith.constant 0 : index
      %25 = vector.load %arg5[%c0_16, %c0_17] : memref<16x32xf32, #tpu.memory_space<vmem>>, vector<16x32xf32>
      tpu.vector_store %arg5[%c0_16, %c0_17], %24 {strides = array<i32>} : memref<16x32xf32, #tpu.memory_space<vmem>>, vector<16x32xf32>,
    } else {
    }
    return
  }
  func.func @transform_0(%arg0: i32, %arg1: i32) -> (i32, i32) {
    %c0_i32 = arith.constant 0 : i32
    %c0_i32_0 = arith.constant 0 : i32
    return %arg0, %c0_i32 : i32, i32
  }
  func.func @transform_1(%arg0: i32, %arg1: i32) -> (i32, i32) {
    %c0_i32 = arith.constant 0 : i32
    %c0_i32_0 = arith.constant 0 : i32
    return %c0_i32, %arg1 : i32, i32
  }
  func.func @transform_2(%arg0: i32, %arg1: i32) -> (i32, i32) {
    %c0_i32 = arith.constant 0 : i32
    %c0_i32_0 = arith.constant 0 : i32
    return %arg1, %c0_i32 : i32, i32
  }
  func.func @transform_3(%arg0: i32, %arg1: i32) -> (i32, i32) {
    %c0_i32 = arith.constant 0 : i32
    %c0_i32_0 = arith.constant 0 : i32
    return %arg0, %c0_i32 : i32, i32
  }
}

</mosaic_0001>

<bundles_post_ra>
// kernel: _forward_impl.1
= control target key start
LH: loop header
LB: loop body
LE: loop exit
PB: predicated region body
PF: predicated region fallthrough
CT: control target
= control target key end

     0   :  { %s431_s0 = inlined_call_operand.vmem [shape: bf16[16,32], index: 0, kind: input, shape index: {}]   ;;  %s432_s1 = inlined_call_operand.vmem [shape: bf16[32,256], index: 1, kind: input, shape index: {}]   ;;  %s433_s2 = inlined_call_operand.vmem [shape: bf16[128,32], index: 2, kind: input, shape index: {}]   ;;  %s434_s3 = inlined_call_operand.hbm [shape: f32[16,32], index: 3, kind: output, shape index: {}]  }
   0x1   :  { %v252_v0 = vld [vmem:[%s432_s1 + $0x10] sm:$0xf]  ;;  %v298_v1 = vld [vmem:[%s432_s1 + $0x14] sm:$0xf0]  ;;  %v244_v2 = vld [vmem:[%s432_s1] sm:$0xf] }
   0x2   :  { %v253_v3 = vor.u32 %v298_v1, %v252_v0  ;;  %v296_v4 = vld [vmem:[%s432_s1 + $0x4] sm:$0xf0]  ;;  %v297_v5 = vld [vmem:[%s432_s1 + $0x14] sm:$0xf]  ;;  %v254_v6 = vld [vmem:[%s432_s1 + $0x18] sm:$0xf0] }
   0x3   :  { %v295_v7 = vld [vmem:[%s432_s1 + $0x4] sm:$0xf]  ;;  %v246_v8 = vld [vmem:[%s432_s1 + $0x8] sm:$0xf0]  ;;  %v245_v9 = vor.u32 %v296_v4, %v244_v2  ;;  %v257_v10 = vor.u32 %v297_v5, %v254_v6 }
   0x4   :  { %64 = vmatpush.bf16.msra.mxu0 %v253_v3 }
   0x5   :  { %8 = vsyncpa [#allocation4], 0  ;;  %78 = vmatpush.bf16.msra.mxu1 %v257_v10  ;;  %v249_v11 = vor.u32 %v295_v7, %v246_v8  ;;  %v294_v12 = vld [vmem:[%s431_s0] sm:$0xff]  ;;  %vm20_vm0 = vcmask 261120   ;;  %v306_v13 = vld [vmem:[%s433_s2 + $0x38] sm:$0xff]  ;;  %v345_v27 = vmov 0.0  }
   0x6   :  { %195 = vmatpush.bf16.msra.mxu2 %v306_v13  ;;  %v305_v14 = vld [vmem:[%s433_s2 + $0x30] sm:$0xff]  ;;  %v304_v15 = vld [vmem:[%s433_s2 + $0x28] sm:$0xff]  ;;  %v303_v16 = vld [vmem:[%s433_s2 + $0x20] sm:$0xff]  ;;  %21 = vst.msk [vmem:[#allocation2] sm:$0xff] %vm20_vm0, %v345_v27  ;;  %s226_s20 = sshll.u32 %s434_s3, 4  ;;  %s347_s21 = smov 128   ;;  %s227_s20 = int_to_ptr.hbm [resolvable:$true] %s226_s20 }
   0x7   :  { %v302_v17 = vld [vmem:[%s433_s2 + $0x18] sm:$0xff]  ;;  %v301_v18 = vld [vmem:[%s433_s2 + $0x10] sm:$0xff]  ;;  %v300_v21 = vld [vmem:[%s433_s2 + $0x8] sm:$0xff]  ;;  %22 = vst.msk [vmem:[#allocation2 + $0x8] sm:$0xff] %vm20_vm0, %v345_v27  ;;  %s348_s22 = smov 8  }
   0x8   :  { %65 = vmatpush.bf16.msra.mxu0 %v245_v9  ;;  %v299_v22 = vld [vmem:[%s433_s2] sm:$0xff]  ;;  %s346_s2 = smov [#allocation3]  }
   0x9   :  { %79 = vmatpush.bf16.msra.mxu1 %v249_v11  ;;  %s224_s17 = sshll.u32 %s346_s2, 4  ;;  %s225_s17 = int_to_ptr.vmem [resolvable:$true] %s224_s17 }
   0xa   :  { %196 = vmatpush.bf16.msra.mxu2 %v305_v14 }
   0xb   :  { %258 = vmatmul.msk.bf16.vlgmr.msra.gmra.mxu0 %vm20_vm0, %v294_v12 }
   0xc   :  { %259 = vmatmul.msk.bf16.vlgmr.msra.gmra.mxu1 %vm20_vm0, %v294_v12 }
   0xd   :  { %v128_v57 = vld [vmem:[#allocation2] sm:$0xff] }
   0xe   :  { %197 = vmatpush.bf16.msra.mxu2 %v304_v15  ;;  %v129_v60 = vld [vmem:[#allocation2 + $0x8] sm:$0xff] }
  0x12   :  { %198 = vmatpush.bf16.msra.mxu2 %v303_v16 }
  0x16   :  { %199 = vmatpush.bf16.msra.mxu2 %v302_v17 }
  0x1a   :  { %200 = vmatpush.bf16.msra.mxu2 %v301_v18 }
  0x1e   :  { %201 = vmatpush.bf16.msra.mxu2 %v300_v21 }
  0x22   :  { %202 = vmatpush.bf16.msra.mxu2 %v299_v22 }
  0x88   :  { %v67_v19 = vpop.f32.mrf.mxu0 }
  0x89   :  { %v260_v20 = vmul.f32 -1.442695, %v67_v19  ;;  %v81_v39 = vpop.f32.mrf.mxu1 }
  0x8b   :  { %311 = vpow2.f32 %v260_v20 }
  0x90   :  { %v69_v23 = vpop.f32.mrf.mxu0 }
  0x91   :  { %v312_v24 = vpop.eup %311  ;;  %v261_v25 = vmul.f32 -1.442695, %v69_v23  ;;  %v83_v53 = vpop.f32.mrf.mxu1 }
  0x92   :  { %v92_v26 = vadd.f32 1.0, %v312_v24 }
  0x93   :  { %313 = vpow2.f32 %v261_v25 }
  0x94   :  { %315 = vrcp.f32 %v92_v26  ;;  %v105_v36 = vand.u32 2147483648, %v92_v26  ;;  %vm99_vm2 = vweird.f32 %v92_v26  ;;  %v103_v37 = vand.u32 2147483647, %v92_v26 }
  0x96   :  { %v106_v42 = vor.u32 1.1754944e-38, %v105_v36  ;;  %vm104_vm4 = vcmp.eq.f32.partialorder %v103_v37, 8.507059e+37 }
  0x99   :  { %v314_v28 = vpop.eup %313 }
  0x9a   :  { %v316_v29 = vpop.eup %315  ;;  %v93_v30 = vadd.f32 1.0, %v314_v28 }
  0x9b   :  { %v95_v31 = vmul.f32 %v316_v29, %v92_v26  ;;  %vm100_vm1 = vweird.f32 %v316_v29 }
  0x9c   :  { %317 = vrcp.f32 %v93_v30  ;;  %vm101_vm3 = vmor %vm99_vm2, %vm100_vm1  ;;  %v120_v43 = vand.u32 2147483648, %v93_v30  ;;  %v118_v45 = vand.u32 2147483647, %v93_v30  ;;  %vm114_vm6 = vweird.f32 %v93_v30 }
  0x9d   :  { %v96_v32 = vsub.f32 1.0, %v95_v31 }
  0x9e   :  { %v121_v48 = vor.u32 1.1754944e-38, %v120_v43  ;;  %vm119_vm8 = vcmp.eq.f32.partialorder %v118_v45, 8.507059e+37 }
  0x9f   :  { %v97_v33 = vmul.f32 %v316_v29, %v96_v32 }
  0xa1   :  { %v98_v34 = vadd.f32 %v316_v29, %v97_v33 }
  0xa2   :  { %v318_v35 = vpop.eup %317 }
  0xa3   :  { %v110_v38 = vmul.f32 %v318_v35, %v93_v30  ;;  %v102_v40 = vsel %vm101_vm3, %v316_v29, %v98_v34  ;;  %vm115_vm5 = vweird.f32 %v318_v35 }
  0xa4   :  { %v107_v46 = vsel %vm104_vm4, %v106_v42, %v102_v40  ;;  %vm116_vm7 = vmor %vm114_vm6, %vm115_vm5 }
  0xa5   :  { %v111_v41 = vsub.f32 1.0, %v110_v38  ;;  %v124_v49 = vmul.f32 %v107_v46, %v67_v19 }
  0xa7   :  { %v112_v44 = vmul.f32 %v318_v35, %v111_v41  ;;  %v126_v54 = vmul.f32 %v124_v49, %v81_v39 }
  0xa9   :  { %v113_v47 = vadd.f32 %v318_v35, %v112_v44 }
  0xab   :  { %v117_v50 = vsel %vm116_vm7, %v318_v35, %v113_v47 }
  0xac   :  { %v122_v51 = vsel %vm119_vm8, %v121_v48, %v117_v50 }
  0xad   :  { %v125_v52 = vmul.f32 %v122_v51, %v69_v23 }
  0xaf   :  { %v127_v55 = vmul.f32 %v125_v52, %v83_v53 }
  0xb1   :  { %v130_v56 = vpack.c.bf16 %v127_v55, %v126_v54 }
  0xb3   :  { %203 = vmatmul.bf16.vlgmr.msra.gmra.mxu2 %v130_v56 }
 0x136   :  { %v204_v58 = vpop.f32.mrf.mxu2 }
 0x137   :  { %v209_v59 = vadd.f32 %v204_v58, %v128_v57 }
 0x139   :  { %211 = vst.msk [vmem:[#allocation2] sm:$0xff] %vm20_vm0, %v209_v59 }
 0x13e   :  { %v206_v61 = vpop.f32.mrf.mxu2 }
 0x13f   :  { %v210_v62 = vadd.f32 %v206_v61, %v129_v60 }
 0x140   :  { %v216_v63 = vld [vmem:[#allocation2] sm:$0xff] }
 0x141   :  { %212 = vst.msk [vmem:[#allocation2 + $0x8] sm:$0xff] %vm20_vm0, %v210_v62 }
 0x142   :  { %218 = vst.msk [vmem:[#allocation3] sm:$0xff] %vm20_vm0, %v216_v63 }
 0x148   :  { %v217_v0 = vld [vmem:[#allocation2 + $0x8] sm:$0xff] }
 0x149   :  { %219 = vst.msk [vmem:[#allocation3 + $0x8] sm:$0xff] %vm20_vm0, %v217_v0 }
 0x14a   :  { %232 = dma.vmem_to_hbm [thread:$0]  %s225_s17, 256, %s227_s20, [#allocation4], %s347_s21, %s347_s21, %s348_s22  }
 0x14b   :  { %343 = dma.done.wait [#allocation4], 256  }
 0x14c   :  { %344 = vsyncadd [#allocation4], 4294967040 }
 0x14d   :  { %237 = vsyncpa [#allocation4], 1 }

</bundles_post_ra>
